<compile_context>
chip_gen: v7x
topology: tpu7x:2x2x1
jax: 0.10.0
libtpu: 0.0.40
codegen_flags: <defaults>
</compile_context>

<pallas_src>
import jax
import jax.numpy as jnp
from jax.experimental import pallas as pl
from jax.experimental.pallas import tpu as pltpu

IN_DIM = 256 // 2   # 128
HID = 96
HID_PAD = 128       # hidden dim zero-padded to a full lane tile
OUT_DIM = 2
OUT_PAD = 128       # lane-dense output block; wrapper slices [:, :2]

# Large batches: ~2048-row tiles (1 MiB f32/tile) amortize the ~0.35 us/step grid
# overhead and sit well under the scoped-VMEM default on v5e/v6e/v7x.
TILE_B_DEFAULT = 2048


def fcn_kernel(x_ref, w1_ref, b1_ref, w2_ref, b2_ref, w3_ref, b3_ref, o_ref):
    x = x_ref[...]  # (TILE_B, 128) f32

    # Linear(128, 128pad) + ReLU
    h1 = jnp.dot(x, w1_ref[...], preferred_element_type=jnp.float32) + b1_ref[...]
    h1 = jnp.maximum(h1, 0.0)

    # Linear(128pad, 128pad) + ReLU  (pad rows/cols are exactly zero)
    h2 = jnp.dot(h1, w2_ref[...], preferred_element_type=jnp.float32) + b2_ref[...]
    h2 = jnp.maximum(h2, 0.0)

    # Linear(128pad, 128pad) -- only lanes 0 and 1 carry real logits
    logits = jnp.dot(h2, w3_ref[...], preferred_element_type=jnp.float32) + b3_ref[...]

    # 2-class softmax closed form: softmax([l0, l1]) = [1 - sigmoid(d), sigmoid(d)], d = l1 - l0.
    d = logits[:, 1:2] - logits[:, 0:1]          # (TILE_B, 1)
    p1 = 1.0 / (1.0 + jnp.exp(-d))               # EUP exp + reciprocal
    p0 = 1.0 - p1

    # Lane-dense store: probs in lanes 0/1, zeros elsewhere (unmasked full-width vst).
    lane = jax.lax.broadcasted_iota(jnp.int32, o_ref.shape, 1)
    o_ref[...] = jnp.where(lane == 0, p0, jnp.where(lane == 1, p1, 0.0)).astype(o_ref.dtype)


def fcn_forward(x, params, *, tile_b=TILE_B_DEFAULT):
    w1, b1, w2, b2, w3, b3 = params
    B = x.shape[0]

    # --- zero-pad parameters to lane-dense shapes (done once per call; tiny) ---
    w1p = jnp.zeros((IN_DIM, HID_PAD), jnp.float32).at[:, :HID].set(w1)
    b1p = jnp.zeros((1, HID_PAD), jnp.float32).at[:, :HID].set(b1)
    w2p = jnp.zeros((HID_PAD, HID_PAD), jnp.float32).at[:HID, :HID].set(w2)
    b2p = jnp.zeros((1, HID_PAD), jnp.float32).at[:, :HID].set(b2)
    w3p = jnp.zeros((HID_PAD, OUT_PAD), jnp.float32).at[:HID, :OUT_DIM].set(w3)
    b3p = jnp.zeros((1, OUT_PAD), jnp.float32).at[:, :OUT_DIM].set(b3)

    # --- batch tiling: tile must be a multiple of 8 sublanes; pad batch to a full grid ---
    tile_b = max(8, (min(tile_b, max(B, 8)) // 8) * 8)
    b_pad = pl.cdiv(B, tile_b) * tile_b
    if b_pad != B:
        x = jnp.pad(x, ((0, b_pad - B), (0, 0)))

    const2 = lambda i: (0, 0)
    out = pl.pallas_call(
        fcn_kernel,
        out_shape=jax.ShapeDtypeStruct((b_pad, OUT_PAD), jnp.float32),
        grid=(b_pad // tile_b,),
        in_specs=[
            # streamed activations (double-buffered by the Pallas pipeline)
            pl.BlockSpec((tile_b, IN_DIM), lambda i: (i, 0)),
            # weights/biases: constant index map -> resident in VMEM across all steps
            pl.BlockSpec((IN_DIM, HID_PAD), const2),
            pl.BlockSpec((1, HID_PAD), const2),
            pl.BlockSpec((HID_PAD, HID_PAD), const2),
            pl.BlockSpec((1, HID_PAD), const2),
            pl.BlockSpec((HID_PAD, OUT_PAD), const2),
            pl.BlockSpec((1, OUT_PAD), const2),
        ],
        out_specs=pl.BlockSpec((tile_b, OUT_PAD), lambda i: (i, 0)),
        compiler_params=pltpu.CompilerParams(
            dimension_semantics=("parallel",),  # shard batch grid across v7x's 2 TCs
        ),
    )(x, w1p, b1p, w2p, b2p, w3p, b3p)

    return out[:B, :OUT_DIM]


def init_params(key):
    # Deterministic synthetic parameters (PyTorch-Linear-like uniform init).
    ks = jax.random.split(key, 6)

    def lin(kw, kb, fan_in, fan_out):
        bound = 1.0 / jnp.sqrt(fan_in)
        w = jax.random.uniform(kw, (fan_in, fan_out), jnp.float32, -bound, bound)
        b = jax.random.uniform(kb, (1, fan_out), jnp.float32, -bound, bound)
        return w, b

    w1, b1 = lin(ks[0], ks[1], IN_DIM, HID)
    w2, b2 = lin(ks[2], ks[3], HID, HID)
    w3, b3 = lin(ks[4], ks[5], HID, OUT_DIM)
    return (w1, b1, w2, b2, w3, b3)


def reference_forward(x, params):
    w1, b1, w2, b2, w3, b3 = params
    h1 = jnp.maximum(x @ w1 + b1, 0.0)
    h2 = jnp.maximum(h1 @ w2 + b2, 0.0)
    logits = h2 @ w3 + b3
    return jax.nn.softmax(logits, axis=1)


if __name__ == "__main__":
    key = jax.random.PRNGKey(0)
    k_x, k_p = jax.random.split(key)

    # Small shapes for the smoke test; tile_b=16 exercises a 4-step pipelined grid.
    B = 64
    x = jax.random.normal(k_x, (B, IN_DIM), jnp.float32)
    params = init_params(k_p)

    out = jax.block_until_ready(fcn_forward(x, params, tile_b=16))
    ref = reference_forward(x, params)

    assert out.shape == (B, OUT_DIM)
    assert jnp.allclose(out, ref, atol=1e-5, rtol=1e-5)
    assert jnp.allclose(jnp.sum(out, axis=1), 1.0, atol=1e-5)

    print("KERNEL_OK")
</pallas_src>

<mosaic_0001>
module attributes {stable_mosaic.version = 11 : i64} {
  func.func @fcn_kernel(%arg0: i32, %arg1: memref<16x128xf32, #tpu.memory_space<vmem>>, %arg2: memref<128x128xf32, #tpu.memory_space<vmem>>, %arg3: memref<1x128xf32, #tpu.memory_space<vmem>>, %arg4: memref<128x128xf32, #tpu.memory_space<vmem>>, %arg5: memref<1x128xf32, #tpu.memory_space<vmem>>, %arg6: memref<128x128xf32, #tpu.memory_space<vmem>>, %arg7: memref<1x128xf32, #tpu.memory_space<vmem>>, %arg8: memref<16x128xf32, #tpu.memory_space<vmem>>) attributes {dimension_semantics = [#tpu.dimension_semantics<parallel>], iteration_bounds = array<i64: 4>, scalar_prefetch = 0 : i64, scratch_operands = 0 : i64, tpu.core_type = #tpu.core_type<tc>, window_params = [{transform_indices = @transform_0, window_bounds = array<i64: 16, 128>}, {pipeline_mode = #tpu.pipeline_mode<synchronous>, transform_indices = @transform_1, window_bounds = array<i64: 128, 128>}, {pipeline_mode = #tpu.pipeline_mode<synchronous>, transform_indices = @transform_2, window_bounds = array<i64: 1, 128>}, {pipeline_mode = #tpu.pipeline_mode<synchronous>, transform_indices = @transform_3, window_bounds = array<i64: 128, 128>}, {pipeline_mode = #tpu.pipeline_mode<synchronous>, transform_indices = @transform_4, window_bounds = array<i64: 1, 128>}, {pipeline_mode = #tpu.pipeline_mode<synchronous>, transform_indices = @transform_5, window_bounds = array<i64: 128, 128>}, {pipeline_mode = #tpu.pipeline_mode<synchronous>, transform_indices = @transform_6, window_bounds = array<i64: 1, 128>}, {transform_indices = @transform_7, window_bounds = array<i64: 16, 128>}]} {
    %c0 = arith.constant 0 : index
    %c0_0 = arith.constant 0 : index
    %0 = vector.load %arg1[%c0, %c0_0] : memref<16x128xf32, #tpu.memory_space<vmem>>, vector<16x128xf32>
    %c0_1 = arith.constant 0 : index
    %c0_2 = arith.constant 0 : index
    %1 = vector.load %arg2[%c0_1, %c0_2] : memref<128x128xf32, #tpu.memory_space<vmem>>, vector<128x128xf32>
    %cst = arith.constant dense<0.000000e+00> : vector<16x128xf32>
    %2 = tpu.matmul %0, %1, %cst {dimension_numbers = #tpu.dot_dimension_numbers<[1], [0], [0], [1], [0, 0, 1, 1], [], []>} : vector<16x128xf32>, vector<128x128xf32>, vector<16x128xf32> -> vector<16x128xf32>
    %c0_3 = arith.constant 0 : index
    %c0_4 = arith.constant 0 : index
    %3 = vector.load %arg3[%c0_3, %c0_4] : memref<1x128xf32, #tpu.memory_space<vmem>>, vector<1x128xf32>
    %4 = vector.broadcast %3 : vector<1x128xf32> to vector<16x128xf32>
    %5 = arith.addf %2, %4 : vector<16x128xf32>
    %cst_5 = arith.constant 0.000000e+00 : f32
    %6 = vector.broadcast %cst_5 : f32 to vector<16x128xf32>
    %7 = arith.maximumf %5, %6 : vector<16x128xf32>
    %c0_6 = arith.constant 0 : index
    %c0_7 = arith.constant 0 : index
    %8 = vector.load %arg4[%c0_6, %c0_7] : memref<128x128xf32, #tpu.memory_space<vmem>>, vector<128x128xf32>
    %cst_8 = arith.constant dense<0.000000e+00> : vector<16x128xf32>
    %9 = tpu.matmul %7, %8, %cst_8 {dimension_numbers = #tpu.dot_dimension_numbers<[1], [0], [0], [1], [0, 0, 1, 1], [], []>} : vector<16x128xf32>, vector<128x128xf32>, vector<16x128xf32> -> vector<16x128xf32>
    %c0_9 = arith.constant 0 : index
    %c0_10 = arith.constant 0 : index
    %10 = vector.load %arg5[%c0_9, %c0_10] : memref<1x128xf32, #tpu.memory_space<vmem>>, vector<1x128xf32>
    %11 = vector.broadcast %10 : vector<1x128xf32> to vector<16x128xf32>
    %12 = arith.addf %9, %11 : vector<16x128xf32>
    %cst_11 = arith.constant 0.000000e+00 : f32
    %13 = vector.broadcast %cst_11 : f32 to vector<16x128xf32>
    %14 = arith.maximumf %12, %13 : vector<16x128xf32>
    %c0_12 = arith.constant 0 : index
    %c0_13 = arith.constant 0 : index
    %15 = vector.load %arg6[%c0_12, %c0_13] : memref<128x128xf32, #tpu.memory_space<vmem>>, vector<128x128xf32>
    %cst_14 = arith.constant dense<0.000000e+00> : vector<16x128xf32>
    %16 = tpu.matmul %14, %15, %cst_14 {dimension_numbers = #tpu.dot_dimension_numbers<[1], [0], [0], [1], [0, 0, 1, 1], [], []>} : vector<16x128xf32>, vector<128x128xf32>, vector<16x128xf32> -> vector<16x128xf32>
    %c0_15 = arith.constant 0 : index
    %c0_16 = arith.constant 0 : index
    %17 = vector.load %arg7[%c0_15, %c0_16] : memref<1x128xf32, #tpu.memory_space<vmem>>, vector<1x128xf32>
    %18 = vector.broadcast %17 : vector<1x128xf32> to vector<16x128xf32>
    %19 = arith.addf %16, %18 : vector<16x128xf32>
    %20 = vector.extract_strided_slice %19 {offsets = [0, 1], sizes = [16, 1], strides = [1, 1]} : vector<16x128xf32> to vector<16x1xf32>
    %21 = vector.extract_strided_slice %19 {offsets = [0, 0], sizes = [16, 1], strides = [1, 1]} : vector<16x128xf32> to vector<16x1xf32>
    %22 = arith.subf %20, %21 : vector<16x1xf32>
    %cst_17 = arith.constant 0.000000e+00 : f32
    %23 = vector.broadcast %cst_17 : f32 to vector<16x1xf32>
    %24 = arith.subf %23, %22 : vector<16x1xf32>
    %25 = math.exp %24 : vector<16x1xf32>
    %cst_18 = arith.constant 1.000000e+00 : f32
    %26 = vector.broadcast %cst_18 : f32 to vector<16x1xf32>
    %27 = arith.addf %26, %25 : vector<16x1xf32>
    %cst_19 = arith.constant 1.000000e+00 : f32
    %28 = vector.broadcast %cst_19 : f32 to vector<16x1xf32>
    %29 = arith.divf %28, %27 : vector<16x1xf32>
    %cst_20 = arith.constant 1.000000e+00 : f32
    %30 = vector.broadcast %cst_20 : f32 to vector<16x1xf32>
    %31 = arith.subf %30, %29 : vector<16x1xf32>
    %32 = tpu.iota {dimensions = array<i32: 1>} : vector<16x128xi32>
    %c0_i32 = arith.constant 0 : i32
    %33 = vector.broadcast %c0_i32 : i32 to vector<16x128xi32>
    %34 = arith.cmpi eq, %32, %33 : vector<16x128xi32>
    %c1_i32 = arith.constant 1 : i32
    %35 = vector.broadcast %c1_i32 : i32 to vector<16x128xi32>
    %36 = arith.cmpi eq, %32, %35 : vector<16x128xi32>
    %cst_21 = arith.constant 0.000000e+00 : f32
    %37 = vector.shape_cast %29 : vector<16x1xf32> to vector<16x1xf32>
    %38 = vector.broadcast %37 : vector<16x1xf32> to vector<16x128xf32>
    %39 = vector.broadcast %cst_21 : f32 to vector<16x128xf32>
    %40 = arith.select %36, %38, %39 : vector<16x128xi1>, vector<16x128xf32>
    %41 = vector.shape_cast %31 : vector<16x1xf32> to vector<16x1xf32>
    %42 = vector.broadcast %41 : vector<16x1xf32> to vector<16x128xf32>
    %43 = arith.select %34, %42, %40 : vector<16x128xi1>, vector<16x128xf32>
    %c0_22 = arith.constant 0 : index
    %c0_23 = arith.constant 0 : index
    %44 = vector.load %arg8[%c0_22, %c0_23] : memref<16x128xf32, #tpu.memory_space<vmem>>, vector<16x128xf32>
    tpu.vector_store %arg8[%c0_22, %c0_23], %43 {strides = array<i32>} : memref<16x128xf32, #tpu.memory_space<vmem>>, vector<16x128xf32>,
    return
  }
  func.func @transform_0(%arg0: i32) -> (i32, i32) {
    %c0_i32 = arith.constant 0 : i32
    %c0_i32_0 = arith.constant 0 : i32
    return %arg0, %c0_i32 : i32, i32
  }
  func.func @transform_1(%arg0: i32) -> (i32, i32) {
    %c0_i32 = arith.constant 0 : i32
    %c0_i32_0 = arith.constant 0 : i32
    %c0_i32_1 = arith.constant 0 : i32
    return %c0_i32, %c0_i32_0 : i32, i32
  }
  func.func @transform_2(%arg0: i32) -> (i32, i32) {
    %c0_i32 = arith.constant 0 : i32
    %c0_i32_0 = arith.constant 0 : i32
    %c0_i32_1 = arith.constant 0 : i32
    return %c0_i32, %c0_i32_0 : i32, i32
  }
  func.func @transform_3(%arg0: i32) -> (i32, i32) {
    %c0_i32 = arith.constant 0 : i32
    %c0_i32_0 = arith.constant 0 : i32
    %c0_i32_1 = arith.constant 0 : i32
    return %c0_i32, %c0_i32_0 : i32, i32
  }
  func.func @transform_4(%arg0: i32) -> (i32, i32) {
    %c0_i32 = arith.constant 0 : i32
    %c0_i32_0 = arith.constant 0 : i32
    %c0_i32_1 = arith.constant 0 : i32
    return %c0_i32, %c0_i32_0 : i32, i32
  }
  func.func @transform_5(%arg0: i32) -> (i32, i32) {
    %c0_i32 = arith.constant 0 : i32
    %c0_i32_0 = arith.constant 0 : i32
    %c0_i32_1 = arith.constant 0 : i32
    return %c0_i32, %c0_i32_0 : i32, i32
  }
  func.func @transform_6(%arg0: i32) -> (i32, i32) {
    %c0_i32 = arith.constant 0 : i32
    %c0_i32_0 = arith.constant 0 : i32
    %c0_i32_1 = arith.constant 0 : i32
    return %c0_i32, %c0_i32_0 : i32, i32
  }
  func.func @transform_7(%arg0: i32) -> (i32, i32) {
    %c0_i32 = arith.constant 0 : i32
    %c0_i32_0 = arith.constant 0 : i32
    return %arg0, %c0_i32 : i32, i32
  }
}

</mosaic_0001>

<bundles_post_ra>
// kernel: tpu_custom_call.1
= control target key start
LH: loop header
LB: loop body
LE: loop exit
PB: predicated region body
PF: predicated region fallthrough
CT: control target
= control target key end

     0   :  { %12 = vsyncpa [#allocation3], 0  ;;  %s1713_s0 = inlined_call_operand.hbm [shape: f32[64,128], index: 0, kind: input, shape index: {}]   ;;  %s1714_s1 = inlined_call_operand.hbm [shape: f32[128,128], index: 1, kind: input, shape index: {}]   ;;  %s1715_s2 = inlined_call_operand.vmem [shape: f32[1,128], index: 2, kind: input, shape index: {}]   ;;  %s1716_s3 = inlined_call_operand.hbm [shape: f32[128,128], index: 3, kind: input, shape index: {}]   ;;  %s1717_s4 = inlined_call_operand.vmem [shape: f32[1,128], index: 4, kind: input, shape index: {}]   ;;  %s1718_s5 = inlined_call_operand.hbm [shape: f32[128,128], index: 5, kind: input, shape index: {}]   ;;  %s1719_s6 = inlined_call_operand.vmem [shape: f32[1,128], index: 6, kind: input, shape index: {}]   ;;  %s1720_s7 = inlined_call_operand.hbm [shape: f32[64,128], index: 7, kind: output, shape index: {}]  }
   0x1   :  { %14 = vsyncpa [#allocation3 + $0x1], 0 }
   0x2   :  { %15 = vsyncpa [#allocation6], 0 }
   0x3   :  { %16 = vsyncpa [#allocation9], 0 }
   0x4   :  { %17 = vsyncpa [#allocation4], 0 }
   0x5   :  { %19 = vsyncpa [#allocation4 + $0x1], 0  ;;  %s1427_s24 = smov 0   ;;  %s1429_s25 = smov 0  }
   0x6   :  { %s1431_s26 = smov 0   ;;  %s1433_s27 = smov 0  }
   0x7 LB: > { %s1448_s28 = sadd.s32 4294967295, %s1374_s27   ;;  %s813_s29 = sadd.s32 4294967294, %s1374_s27   ;;  %s1374_s27 = sphi %s1433_s27, %s1745_s27   ;;  %s1370_s26 = sphi %s1431_s26, %s1744_s26   ;;  %s1366_s25 = sphi %s1429_s25, %s1743_s25   ;;  %s1362_s24 = sphi %s1427_s24, %s1742_s24  }
   0x8   : > { %p45_p0 = scmp.ne.s32.totalorder %s1366_s25, %s1362_s24  ;;  %p1721_p1 = scmp.eq.s32.totalorder %s1448_s28, 0 }
   0x9   : > { %p201_p3 = scmp.eq.s32.totalorder %s813_s29, 3  ;;  %p814_p5 = scmp.ge.s32.totalorder %s1374_s27, 1 }
   0xa   : > { %p1457_p4 = por %p1721_p1, %p45_p0  ;;  %p208_p7 = scmp.lt.s32.totalorder %s1374_s27, 5 }
   0xb   : > { %p1462_p6 = por %p201_p3, %p45_p0  ;;  %s1376_s10 = smov [#allocation5]  }
   0xc   : > { %s1725_s30 = scalar_select %p1457_p4, 1, 0 }
   0xd   : > { %s1726_s8 = scalar_select %p1462_p6, 1, 0 }
   0xe   : > { %p1467_p8 = pnand %p814_p5, %p208_p7  ;;  %s220_s11 = sshll.u32 %s1376_s10, 4  ;;  %s1471_s11 = int_to_ptr.vmem [resolvable:$true] %s220_s11 }
   0xf   : > { %1727 = sst [smem:[#allocation15_spill]] %s1726_s8  ;;  %s1377_s13 = smov [#allocation7]  }
  0x10   : > { %s1728_s9 = scalar_select %p1467_p8, 1, 0 }
  0x11   : > { %p1109_p9 = pneg %p1467_p8  ;;  %s236_s14 = sshll.u32 %s1377_s13, 4  ;;  %s1481_s14 = int_to_ptr.vmem [resolvable:$true] %s236_s14 }
  0x12   : > { %s1378_s15 = smov [#allocation8]   ;;  %s1186_s19 = scalar_lea.hbm %s1714_s1, 2048 }
  0x13   : > { %p1477_p10 = pnand %p1109_p9, %p1721_p1  ;;  %s1483_s16 = sshll.u32 %s1378_s15, 4  ;;  %s253_s16 = int_to_ptr.vmem [resolvable:$true] %s1483_s16 }
  0x14   : > { %p1187_p11 = scmp.ne.s32.totalorder %s1714_s1, %s1186_s19  ;;  %p1193_p3 = scmp.lt.u32.totalorder %s1186_s19, %s1714_s1 }
  0x15   : > { %p1493_p12 = pneg %p1477_p10 }
  0x17   : > { %p1189_p13 = pnand %p1493_p12, %p1187_p11 }
  0x19   : > { %p1190_p0 = pneg %p1189_p13 }
  0x1b   : > { %p1195_p5 = pnand %p1193_p3, %p1190_p0 }
  0x1d   : > { %1198 = shalt.err (!%p1195_p5)
}
  0x1e   : > { %s1199_s10 = scalar_lea.vmem %s1471_s11, 2048  ;;  %p1207_p2 = scmp.lt.s32.totalorder %s1471_s11, %s1471_s11 }
  0x1f   : > { %p1200_p7 = scmp.ne.s32.totalorder %s1471_s11, %s1199_s10  ;;  %p1208_p6 = scmp.lt.s32.totalorder %s1199_s10, %s1199_s10 }
  0x21   : > { %p1202_p9 = pnand %p1200_p7, %p1493_p12  ;;  %p1209_p11 = por %p1208_p6, %p1207_p2 }
  0x23   : > { %p1203_p1 = pneg %p1202_p9 }
  0x25   : > { %p1210_p13 = pnand %p1209_p11, %p1203_p1 }
  0x27   : > { %1213 = shalt.err (!%p1210_p13)
}
  0x28   : > { %s1379_s13 = smov 128   ;;  %s1380_s15 = smov 8  }
  0x29   : > { %1112 = dma.hbm_to_vmem [thread:$0]  (!%p1477_p10), %s1714_s1, 2048, %s1471_s11, [#allocation6], %s1379_s13, %s1379_s13, %s1380_s15  }
  0x2a   : > { %s1214_s21 = scalar_lea.hbm %s1716_s3, 2048 }
  0x2b   : > { %p1215_p1 = scmp.ne.s32.totalorder %s1716_s3, %s1214_s21  ;;  %p1221_p0 = scmp.lt.u32.totalorder %s1214_s21, %s1716_s3 }
  0x2d   : > { %p1217_p2 = pnand %p1215_p1, %p1493_p12 }
  0x2f   : > { %p1218_p6 = pneg %p1217_p2 }
  0x31   : > { %p1223_p3 = pnand %p1221_p0, %p1218_p6 }
  0x33   : > { %1226 = shalt.err (!%p1223_p3)
}
  0x34   : > { %s1227_s11 = scalar_lea.vmem %s1481_s14, 2048  ;;  %p1235_p11 = scmp.lt.s32.totalorder %s1481_s14, %s1481_s14 }
  0x35   : > { %p1228_p5 = scmp.ne.s32.totalorder %s1481_s14, %s1227_s11  ;;  %p1236_p13 = scmp.lt.s32.totalorder %s1227_s11, %s1227_s11 }
  0x37   : > { %p1230_p7 = pnand %p1228_p5, %p1493_p12  ;;  %p1237_p1 = por %p1236_p13, %p1235_p11 }
  0x39   : > { %p1231_p9 = pneg %p1230_p7 }
  0x3b   : > { %p1238_p2 = pnand %p1237_p1, %p1231_p9 }
  0x3d   : > { %1241 = shalt.err (!%p1238_p2)
}
  0x3e   : > { %1115 = dma.hbm_to_vmem [thread:$0]  (!%p1477_p10), %s1716_s3, 2048, %s1481_s14, [#allocation6], %s1379_s13, %s1379_s13, %s1380_s15  }
  0x3f   : > { %s1242_s20 = scalar_lea.hbm %s1718_s5, 2048 }
  0x40   : > { %p1243_p6 = scmp.ne.s32.totalorder %s1718_s5, %s1242_s20  ;;  %p1249_p5 = scmp.lt.u32.totalorder %s1242_s20, %s1718_s5 }
  0x42   : > { %p1245_p0 = pnand %p1243_p6, %p1493_p12 }
  0x44   : > { %p1246_p3 = pneg %p1245_p0 }
  0x46   : > { %p1251_p7 = pnand %p1249_p5, %p1246_p3 }
  0x48   : > { %1254 = shalt.err (!%p1251_p7)
}
  0x49   : > { %s1255_s11 = scalar_lea.vmem %s253_s16, 2048  ;;  %p1263_p1 = scmp.lt.s32.totalorder %s253_s16, %s253_s16 }
  0x4a   : > { %p1256_p9 = scmp.ne.s32.totalorder %s253_s16, %s1255_s11  ;;  %p1264_p2 = scmp.lt.s32.totalorder %s1255_s11, %s1255_s11 }
  0x4c   : > { %p1258_p11 = pnand %p1256_p9, %p1493_p12  ;;  %p1265_p4 = por %p1264_p2, %p1263_p1 }
  0x4e   : > { %p1259_p13 = pneg %p1258_p11 }
  0x50   : > { %p1266_p8 = pnand %p1265_p4, %p1259_p13 }
  0x52   : > { %1269 = shalt.err (!%p1266_p8)
}
  0x53   : > { %1118 = dma.hbm_to_vmem [thread:$0]  (!%p1477_p10), %s1718_s5, 2048, %s253_s16, [#allocation9], %s1379_s13, %s1379_s13, %s1380_s15  }
  0x54   : > { %s1566_s22 = sadd.s32 1, %s1374_s27   ;;  %s32_s17 = sadd.s32 1, %s1370_s26 }
  0x55   : > { %s29_s12 = ssub.s32 %s1374_s27, %s1566_s22  ;;  %p39_p8 = scmp.ne.s32.totalorder %s1370_s26, %s1366_s25 }
  0x56   : > { %p30_p4 = scmp.eq.s32.totalorder %s29_s12, 0  ;;  %p40_p12 = scmp.eq.s32.totalorder %s1374_s27, 0 }
  0x57   : > { %p1130_p6 = scmp.lt.s32.totalorder %s1374_s27, 4  ;;  %p1731_p3 = scmp.eq.s32.totalorder %s1448_s28, 3 }
  0x58   : > { %s1576_s18 = scalar_select %p30_p4, %s1370_s26, %s32_s17  }
  0x59   : > { %p41_p0 = por %p40_p12, %p39_p8  ;;  %p1580_p5 = por %p1731_p3, %p39_p8 }
  0x5a   : > { %s269_s20 = sand.u32 1, %s1370_s26   ;;  %s836_s21 = sshll.u32 %s1374_s27, 8 }
  0x5b   : > { %s819_s16 = sshll.u32 %s269_s20, 4  ;;  %s1589_s10 = scalar_lea.hbm %s1713_s0, %s836_s21 }
  0x5c   : > { %s273_s11 = scalar_lea.vmem [#allocation2], %s819_s16  ;;  %p1591_p10 = pnand %p1130_p6, %p41_p0 }
  0x5d   : > { %s280_s14 = sshll.u32 %s273_s11, 4  ;;  %s1597_s12 = scalar_lea.sflag [#allocation3], %s269_s20  ;;  %s1595_s14 = int_to_ptr.vmem [resolvable:$true] %s280_s14 }
  0x5e   : > { %s1270_s17 = scalar_lea.hbm %s1589_s10, 256  ;;  %p1272_p9 = pneg %p1591_p10 }
  0x5f   : > { %p1271_p7 = scmp.ne.s32.totalorder %s1589_s10, %s1270_s17  ;;  %s1275_s23 = scalar_lea.hbm %s1713_s0, 1024 }
  0x60   : > { %p1276_p1 = scmp.lt.u32.totalorder %s1589_s10, %s1713_s0  ;;  %p1277_p2 = scmp.lt.u32.totalorder %s1275_s23, %s1270_s17 }
  0x61   : > { %p1273_p11 = pnand %p1272_p9, %p1271_p7  ;;  %p1279_p8 = scmp.lt.u32.totalorder %s1270_s17, %s1589_s10 }
  0x62   : > { %p1278_p4 = por %p1277_p2, %p1276_p1 }
  0x63   : > { %p1274_p13 = pneg %p1273_p11 }
  0x64   : > { %p1280_p12 = por %p1279_p8, %p1278_p4 }
  0x66   : > { %p1281_p6 = pnand %p1280_p12, %p1274_p13 }
  0x68   : > { %1284 = shalt.err (!%p1281_p6)
}
  0x69   : > { %s1285_s20 = scalar_lea.vmem %s1595_s14, 256  ;;  %s1381_s21 = smov [#allocation2]  }
  0x6a   : > { %p1286_p0 = scmp.ne.s32.totalorder %s1595_s14, %s1285_s20  ;;  %s1290_s16 = sshll.u32 %s1381_s21, 4  ;;  %s1291_s16 = int_to_ptr.vmem [resolvable:$false] %s1290_s16 }
  0x6b   : > { %s1292_s29 = scalar_lea.vmem %s1291_s16, 512  ;;  %p1293_p11 = scmp.lt.s32.totalorder %s1595_s14, %s1291_s16 }
  0x6c   : > { %p1288_p3 = pnand %p1286_p0, %p1272_p9  ;;  %p1294_p1 = scmp.lt.s32.totalorder %s1292_s29, %s1285_s20 }
  0x6e   : > { %p1289_p7 = pneg %p1288_p3  ;;  %p1295_p2 = por %p1294_p1, %p1293_p11 }
  0x70   : > { %p1296_p4 = pnand %p1295_p2, %p1289_p7 }
  0x72   : > { %1299 = shalt.err (!%p1296_p4)
}
  0x73   : > { %1122 = dma.hbm_to_vmem [thread:$0]  (!%p1591_p10), %s1589_s10, 256, %s1595_s14, %s1597_s12, %s1379_s13, %s1379_s13, %s1380_s15  }
  0x74   : > { %p1734_p9 = scmp.ne.s32.totalorder %s1728_s9, 0 }
  0x75   : > { %s1631_s17 = sand.u32 (!%p1734_p9), 1, %s1366_s25   ;;  %p1735_p13 = scmp.ne.s32.totalorder (!%p1734_p9), %s1725_s30, 0 }
  0x76   : > { %292 = sbr.rel (%p1734_p9) target bundleno = 1120 (0x460), region = 48  ;;  %s823_s23 = sshll.u32 (!%p1734_p9), %s1631_s17, 4 }
  0x77   : > { %s295_s11 = scalar_lea.sflag (!%p1734_p9), [#allocation3], %s1631_s17  ;;  %s1637_s8 = scalar_lea.vmem (!%p1734_p9), [#allocation2], %s823_s23 }
  0x7d   : > { %1345 = dma.done.wait (%p1735_p13), %s295_s11, 256  }
  0x7e   : > { %1347 = vsyncadd (%p1735_p13), %s295_s11, 4294967040  ;;  %p1736_p10 = scmp.eq.s32.totalorder %s1448_s28, 0 }
  0x80   : > { %1349 = dma.done.wait (%p1736_p10), [#allocation6], 4096   ;;  %p1737_p8 = pmov %p1736_p10 }
  0x82   : > { %1351 = vsyncadd (%p1737_p8), [#allocation6], 4294963200  ;;  %p1738_p12 = pmov %p1737_p8 }
  0x83   : > { %p1739_p6 = pmov %p1737_p8 }
  0x84   : > { %1353 = dma.done.wait (%p1738_p12), [#allocation9], 2048  }
  0x85   : > { %1355 = vsyncadd (%p1739_p6), [#allocation9], 4294965248  ;;  %v345_v0 = vld [vmem:[#allocation5] sm:$0xff]  ;;  %v346_v1 = vld [vmem:[#allocation5 + $0x8] sm:$0xff]  ;;  %s1382_s12 = smov 1   ;;  %s340_s20 = scalar_lea.vmem [#allocation10], %s823_s23 }
  0x86   : > { %v347_v2 = vld [vmem:[#allocation5 + $0x10] sm:$0xff]  ;;  %v997_v3 = vpack.c.bf16 %v346_v1, %v345_v0  ;;  %v348_v4 = vld [vmem:[#allocation5 + $0x18] sm:$0xff]  ;;  %v349_v6 = vld [vmem:[#allocation5 + $0x20] sm:$0xff]  ;;  %s711_s21 = sshll.u32 %s340_s20, 4  ;;  %s837_s16 = sshll.u32 %s1448_s28, 8  ;;  %s1665_s21 = int_to_ptr.vmem [resolvable:$true] %s711_s21 }
  0x87   : > { %v1001_v5 = vpack.c.bf16 %v348_v4, %v347_v2  ;;  %v350_v7 = vld [vmem:[#allocation5 + $0x28] sm:$0xff]  ;;  %v351_v9 = vld [vmem:[#allocation5 + $0x30] sm:$0xff]  ;;  %v352_v10 = vld [vmem:[#allocation5 + $0x38] sm:$0xff]  ;;  %s698_s23 = scalar_lea.sflag [#allocation4], %s1631_s17  ;;  %s1300_s28 = scalar_lea.vmem %s1665_s21, 256 }
  0x88   : > { %998 = vmatprep.subr.bf16.mxu0 %v997_v3  ;;  %v1005_v8 = vpack.c.bf16 %v350_v7, %v349_v6  ;;  %v343_v11 = vld [vmem:[%s1637_s8] sm:$0xff]  ;;  %v446_v13 = vld [vmem:[#allocation7 + $0x8] sm:$0xff]  ;;  %v448_v16 = vld [vmem:[#allocation7 + $0x18] sm:$0xff]  ;;  %v1009_v20 = vpack.c.bf16 %v352_v10, %v351_v9  ;;  %p1301_p0 = scmp.ne.s32.totalorder %s1665_s21, %s1300_s28  ;;  %s1384_s30 = smov [#allocation10]  }
  0x89   : > { %1000 = vmatpush3.bf16.msra.mxu0 %v997_v3  ;;  %924 = vmatprep.mubr.f32.mxu0 %v343_v11  ;;  %v445_v12 = vld [vmem:[#allocation7] sm:$0xff]  ;;  %v447_v14 = vld [vmem:[#allocation7 + $0x10] sm:$0xff]  ;;  %v450_v19 = vld [vmem:[#allocation7 + $0x28] sm:$0xff]  ;;  %s1304_s9 = sshll.u32 %s1384_s30, 4  ;;  %s1305_s9 = int_to_ptr.vmem [resolvable:$false] %s1304_s9 }
  0x8a   : > { %1002 = vmatprep.subr.bf16.mxu0 %v1001_v5  ;;  %v1029_v15 = vpack.c.bf16 %v446_v13, %v445_v12  ;;  %v1033_v17 = vpack.c.bf16 %v448_v16, %v447_v14  ;;  %v449_v18 = vld [vmem:[#allocation7 + $0x20] sm:$0xff]  ;;  %v354_v22 = vld [vmem:[#allocation5 + $0x48] sm:$0xff]  ;;  %v451_v24 = vld [vmem:[#allocation7 + $0x30] sm:$0xff]  ;;  %p1302_p3 = pnand %p1301_p0, %p1580_p5  ;;  %s1306_s13 = scalar_lea.vmem %s1305_s9, 512 }
  0x8b   : > { %v353_v21 = vld [vmem:[#allocation5 + $0x40] sm:$0xff]  ;;  %v1037_v23 = vpack.c.bf16 %v450_v19, %v449_v18  ;;  %v452_v25 = vld [vmem:[#allocation7 + $0x38] sm:$0xff]  ;;  %v355_v27 = vld [vmem:[#allocation5 + $0x50] sm:$0xff]  ;;  %p1307_p11 = scmp.lt.s32.totalorder %s1665_s21, %s1305_s9  ;;  %p1308_p1 = scmp.lt.s32.totalorder %s1306_s13, %s1300_s28 }
  0x8c   : > { %1030 = vmatprep.subr.bf16.mxu1 %v1029_v15  ;;  %v1013_v26 = vpack.c.bf16 %v354_v22, %v353_v21  ;;  %v356_v28 = vld [vmem:[#allocation5 + $0x58] sm:$0xff]  ;;  %v1041_v29 = vpack.c.bf16 %v452_v25, %v451_v24  ;;  %v453_v30 = vld [vmem:[#allocation7 + $0x40] sm:$0xff]  ;;  %v454_v31 = vld [vmem:[#allocation7 + $0x48] sm:$0xff]  ;;  %p1303_p7 = pneg %p1302_p3 }
  0x8d   : > { %1004 = vmatpush3.bf16.msra.mxu0 %v1001_v5  ;;  %1032 = vmatpush3.bf16.msra.mxu1 %v1029_v15  ;;  %v1017_v32 = vpack.c.bf16 %v356_v28, %v355_v27  ;;  %v357_v33 = vld [vmem:[#allocation5 + $0x60] sm:$0xff]  ;;  %v358_v34 = vld [vmem:[#allocation5 + $0x68] sm:$0xff]  ;;  %v1045_v35 = vpack.c.bf16 %v454_v31, %v453_v30  ;;  %v455_v36 = vld [vmem:[#allocation7 + $0x50] sm:$0xff]  ;;  %p1309_p2 = por %p1308_p1, %p1307_p11 }
  0x8e   : > { %1006 = vmatprep.subr.bf16.mxu0 %v1005_v8  ;;  %1034 = vmatprep.subr.bf16.mxu1 %v1033_v17  ;;  %v456_v37 = vld [vmem:[#allocation7 + $0x58] sm:$0xff]  ;;  %v1021_v38 = vpack.c.bf16 %v358_v34, %v357_v33  ;;  %v359_v39 = vld [vmem:[#allocation5 + $0x70] sm:$0xff]  ;;  %v457_v42 = vld [vmem:[#allocation7 + $0x60] sm:$0xff] }
  0x8f   : > { %v360_v40 = vld [vmem:[#allocation5 + $0x78] sm:$0xff]  ;;  %v1049_v41 = vpack.c.bf16 %v456_v37, %v455_v36  ;;  %v458_v43 = vld [vmem:[#allocation7 + $0x68] sm:$0xff]  ;;  %v459_v47 = vld [vmem:[#allocation7 + $0x70] sm:$0xff]  ;;  %p1310_p4 = pnand %p1309_p2, %p1303_p7 }
  0x90   : > { %v1025_v44 = vpack.c.bf16 %v360_v40, %v359_v39  ;;  %v1053_v45 = vpack.c.bf16 %v458_v43, %v457_v42  ;;  %v344_v46 = vld [vmem:[%s1637_s8 + $0x8] sm:$0xff]  ;;  %v545_v50 = vld [vmem:[#allocation8] sm:$0xff]  ;;  %v547_v52 = vld [vmem:[#allocation8 + $0x10] sm:$0xff]  ;;  %s1670_s8 = scalar_lea.hbm %s1720_s7, %s837_s16 }
  0x91   : > { %1008 = vmatpush3.bf16.msra.mxu0 %v1005_v8  ;;  %1036 = vmatpush3.bf16.msra.mxu1 %v1033_v17  ;;  %v460_v48 = vld [vmem:[#allocation7 + $0x78] sm:$0xff]  ;;  %v546_v51 = vld [vmem:[#allocation8 + $0x8] sm:$0xff]  ;;  %v549_v56 = vld [vmem:[#allocation8 + $0x20] sm:$0xff] }
  0x92   : > { %1010 = vmatprep.subr.bf16.mxu0 %v1009_v20  ;;  %1038 = vmatprep.subr.bf16.mxu1 %v1037_v23  ;;  %v1057_v49 = vpack.c.bf16 %v460_v48, %v459_v47  ;;  %v1061_v53 = vpack.c.bf16 %v546_v51, %v545_v50  ;;  %v548_v54 = vld [vmem:[#allocation8 + $0x18] sm:$0xff]  ;;  %v550_v57 = vld [vmem:[#allocation8 + $0x28] sm:$0xff]  ;;  %v551_v59 = vld [vmem:[#allocation8 + $0x30] sm:$0xff] }
  0x93   : > { %v1065_v55 = vpack.c.bf16 %v548_v54, %v547_v52  ;;  %v1069_v58 = vpack.c.bf16 %v550_v57, %v549_v56  ;;  %v552_v60 = vld [vmem:[#allocation8 + $0x38] sm:$0xff]  ;;  %v553_v62 = vld [vmem:[#allocation8 + $0x40] sm:$0xff]  ;;  %v554_v63 = vld [vmem:[#allocation8 + $0x48] sm:$0xff] }
  0x94   : > { %v1073_v61 = vpack.c.bf16 %v552_v60, %v551_v59  ;;  %v1077_v0 = vpack.c.bf16 %v554_v63, %v553_v62  ;;  %v555_v1 = vld [vmem:[#allocation8 + $0x50] sm:$0xff]  ;;  %v556_v2 = vld [vmem:[#allocation8 + $0x58] sm:$0xff]  ;;  %v557_v4 = vld [vmem:[#allocation8 + $0x60] sm:$0xff] }
  0x95   : > { %1012 = vmatpush3.bf16.msra.mxu0 %v1009_v20  ;;  %1040 = vmatpush3.bf16.msra.mxu1 %v1037_v23  ;;  %v1081_v3 = vpack.c.bf16 %v556_v2, %v555_v1  ;;  %v558_v5 = vld [vmem:[#allocation8 + $0x68] sm:$0xff]  ;;  %v828_v7 = vld [vmem:[%s1715_s2] ss:$0 sm:$0xff]  ;;  %v559_v14 = vld [vmem:[#allocation8 + $0x70] sm:$0xff] }
  0x96   : > { %1014 = vmatprep.subr.bf16.mxu0 %v1013_v26  ;;  %1042 = vmatprep.subr.bf16.mxu1 %v1041_v29  ;;  %v1085_v6 = vpack.c.bf16 %v558_v5, %v557_v4  ;;  %v560_v15 = vld [vmem:[#allocation8 + $0x78] sm:$0xff]  ;;  %v829_v17 = vld [vmem:[%s1717_s4] ss:$0 sm:$0xff] }
  0x97   : > { %v1089_v16 = vpack.c.bf16 %v560_v15, %v559_v14  ;;  %v830_v24 = vld [vmem:[%s1719_s6] ss:$0 sm:$0xff] }
  0x99   : > { %1016 = vmatpush3.bf16.msra.mxu0 %v1013_v26  ;;  %1044 = vmatpush3.bf16.msra.mxu1 %v1041_v29  ;;  %v1383_v29 = vmov 1  }
  0x9a   : > { %1018 = vmatprep.subr.bf16.mxu0 %v1017_v32  ;;  %1046 = vmatprep.subr.bf16.mxu1 %v1045_v35 }
  0x9b   : > { %1177 = vset.pattern.permute.xlu0 %v1383_v29  ;;  %1176 = vset.pattern.permute.xlu1 %v1383_v29 }
  0x9d   : > { %1020 = vmatpush3.bf16.msra.mxu0 %v1017_v32  ;;  %1048 = vmatpush3.bf16.msra.mxu1 %v1045_v35 }
  0x9e   : > { %1022 = vmatprep.subr.bf16.mxu0 %v1021_v38  ;;  %1050 = vmatprep.subr.bf16.mxu1 %v1049_v41 }
  0xa1   : > { %1024 = vmatpush3.bf16.msra.mxu0 %v1021_v38  ;;  %1052 = vmatpush3.bf16.msra.mxu1 %v1049_v41 }
  0xa2   : > { %1026 = vmatprep.subr.bf16.mxu0 %v1025_v44  ;;  %1054 = vmatprep.subr.bf16.mxu1 %v1053_v45 }
  0xa5   : > { %1028 = vmatpush3.bf16.msra.mxu0 %v1025_v44  ;;  %1056 = vmatpush3.bf16.msra.mxu1 %v1053_v45 }
  0xa6   : > { %1058 = vmatprep.subr.bf16.mxu1 %v1057_v49  ;;  %1062 = vmatprep.subr.bf16.mxu0 %v1061_v53 }
  0xa8   : > { %925 = vmatmul.mubr.f32.vlgmr.msra.gmra.mrb[0].mxu0 %v344_v46  ;;  %v667_v46 = vlaneseq }
  0xa9   : > { %1060 = vmatpush3.bf16.msra.mxu1 %v1057_v49  ;;  %1064 = vmatpush3.bf16.msra.mxu0 %v1061_v53 }
  0xaa   : > { %1066 = vmatprep.subr.bf16.mxu0 %v1065_v55  ;;  %v668_v47 = vand.u32 127, %v667_v46 }
  0xac   : > { %vm669_vm0 = vcmp.eq.s32.totalorder %v668_v47, 0  ;;  %vm670_vm1 = vcmp.eq.s32.totalorder %v668_v47, 1 }
  0xad   : > { %1068 = vmatpush3.bf16.msra.mxu0 %v1065_v55 }
  0xae   : > { %1070 = vmatprep.subr.bf16.mxu0 %v1069_v58 }
  0xb1   : > { %1072 = vmatpush3.bf16.msra.mxu0 %v1069_v58 }
  0xb2   : > { %1074 = vmatprep.subr.bf16.mxu0 %v1073_v61 }
  0xb5   : > { %1076 = vmatpush3.bf16.msra.mxu0 %v1073_v61 }
  0xb6   : > { %1078 = vmatprep.subr.bf16.mxu0 %v1077_v0 }
  0xb9   : > { %1080 = vmatpush3.bf16.msra.mxu0 %v1077_v0 }
  0xba   : > { %1082 = vmatprep.subr.bf16.mxu0 %v1081_v3 }
  0xbd   : > { %1084 = vmatpush3.bf16.msra.mxu0 %v1081_v3 }
  0xbe   : > { %1086 = vmatprep.subr.bf16.mxu0 %v1085_v6 }
  0xc1   : > { %1088 = vmatpush3.bf16.msra.mxu0 %v1085_v6 }
  0xc2   : > { %1090 = vmatprep.subr.bf16.mxu0 %v1089_v16 }
  0xc5   : > { %1092 = vmatpush3.bf16.msra.mxu0 %v1089_v16 }
 0x17b   : > { %v926_v8 = vpop.f32.mrb[0].mxu0 }
 0x17c   : > { %v440_v9 = vadd.f32 %v926_v8, %v828_v7  ;;  %v434_v10 = vpop.f32.mrb[1].mxu0 }
 0x17d   : > { %v435_v11 = vadd.f32 %v828_v7, %v434_v10 }
 0x17e   : > { %v444_v13 = vmax.f32 %v440_v9, 0.0 }
 0x17f   : > { %v443_v12 = vmax.f32 %v435_v11, 0.0 }
 0x181   : > { %959 = vmatprep.mubr.f32.mxu1 %v443_v12 }
 0x182   : > { %960 = vmatmul.mubr.f32.vlgmr.msra.gmra.mrb[0].mxu1 %v444_v13 }
 0x255   : > { %v961_v18 = vpop.f32.mrb[0].mxu1 }
 0x256   : > { %v540_v19 = vadd.f32 %v961_v18, %v829_v17  ;;  %v534_v20 = vpop.f32.mrb[1].mxu1 }
 0x257   : > { %v535_v21 = vadd.f32 %v829_v17, %v534_v20 }
 0x258   : > { %v544_v23 = vmax.f32 %v540_v19, 0.0 }
 0x259   : > { %v543_v22 = vmax.f32 %v535_v21, 0.0 }
 0x25b   : > { %994 = vmatprep.mubr.f32.mxu0 %v543_v22 }
 0x25c   : > { %995 = vmatmul.mubr.f32.vlgmr.msra.gmra.mrb[2].mxu0 %v544_v23 }
 0x32f   : > { %v996_v25 = vpop.f32.mrb[2].mxu0 }
 0x330   : > { %v634_v26 = vpop.f32.mrb[3].mxu0  ;;  %v640_v28 = vadd.f32 %v996_v25, %v830_v24 }
 0x331   : > { %v635_v27 = vadd.f32 %v830_v24, %v634_v26 }
 0x333   : > { %645 = vrot.lane.b32.xlu0 %v635_v27, %s1382_s12 }
 0x337   : > { %647 = vrot.lane.b32.xlu0 %v640_v28, %s1382_s12 }
 0x3a5   : > { %v646_v30 = vpop.permute.xlu0 %645 }
 0x3a6   : > { %v651_v31 = vsub.f32 %v635_v27, %v646_v30 }
 0x3a8   : > { %v653_v32 = vsub.f32 0.0, %v651_v31 }
 0x3a9   : > { %v648_v33 = vpop.permute.xlu0 %647 }
 0x3aa   : > { %v655_v34 = vmul.f32 1.442695, %v653_v32  ;;  %v652_v35 = vsub.f32 %v640_v28, %v648_v33 }
 0x3ac   : > { %1178 = vpow2.f32 %v655_v34  ;;  %v654_v36 = vsub.f32 0.0, %v652_v35 }
 0x3ae   : > { %v657_v37 = vmul.f32 1.442695, %v654_v36 }
 0x3b0   : > { %1180 = vpow2.f32 %v657_v37 }
 0x3b6   : > { %v1179_v38 = vpop.eup %1178 }
 0x3b7   : > { %v659_v39 = vadd.f32 1.0, %v1179_v38 }
 0x3b9   : > { %1182 = vrcp.f32 %v659_v39 }
 0x3ba   : > { %v1181_v40 = vpop.eup %1180 }
 0x3bb   : > { %v660_v41 = vadd.f32 1.0, %v1181_v40 }
 0x3bd   : > { %1184 = vrcp.f32 %v660_v41 }
 0x3c3   : > { %v1183_v42 = vpop.eup %1182 }
 0x3c4   : > { %v665_v43 = vsub.f32 1.0, %v1183_v42 }
 0x3c6   : > { %685 = vperm.xlu0 %1177, %v665_v43  }
 0x3c7   : > { %v1185_v44 = vpop.eup %1184 }
 0x3c8   : > { %678 = vperm.xlu1 %1176, %v1185_v44   ;;  %v666_v45 = vsub.f32 1.0, %v1185_v44 }
 0x3cc   : > { %673 = vperm.xlu1 %1176, %v1183_v42  }
 0x3d0   : > { %690 = vperm.xlu1 %1176, %v666_v45  }
 0x445   : > { %v686_v50 = vpop.permute.xlu0 %685 }
 0x447   : > { %v679_v48 = vpop.permute.xlu1 %678 }
 0x448   : > { %v682_v53 = vsel %vm670_vm1, %v679_v48, 0.0 }
 0x44b   : > { %v674_v49 = vpop.permute.xlu1 %673 }
 0x44c   : > { %v681_v51 = vsel %vm670_vm1, %v674_v49, 0.0 }
 0x44d   : > { %v693_v52 = vsel %vm669_vm0, %v686_v50, %v681_v51 }
 0x44e   : > { %695 = vst [vmem:[%s340_s20] sm:$0xff] %v693_v52 }
 0x44f   : > { %v691_v54 = vpop.permute.xlu1 %690 }
 0x450   : > { %v694_v55 = vsel %vm669_vm0, %v691_v54, %v682_v53 }
 0x451   : > { %696 = vst [vmem:[%s340_s20 + $0x8] sm:$0xff] %v694_v55 }
 0x452   : > { %1313 = shalt.err (!%p1310_p4)
}
 0x453   : > { %s1314_s15 = scalar_lea.hbm %s1670_s8, 256  ;;  %s1318_s12 = scalar_lea.hbm %s1720_s7, 1024 }
 0x454   : > { %p1315_p9 = scmp.ne.s32.totalorder %s1670_s8, %s1314_s15  ;;  %p1319_p8 = scmp.lt.u32.totalorder %s1670_s8, %s1720_s7 }
 0x455   : > { %p1320_p12 = scmp.lt.u32.totalorder %s1318_s12, %s1314_s15  ;;  %p1322_p0 = scmp.lt.u32.totalorder %s1314_s15, %s1670_s8 }
 0x456   : > { %p1316_p13 = pnand %p1315_p9, %p1580_p5 }
 0x457   : > { %p1321_p6 = por %p1320_p12, %p1319_p8 }
 0x458   : > { %p1317_p10 = pneg %p1316_p13 }
 0x459   : > { %p1323_p3 = por %p1322_p0, %p1321_p6 }
 0x45b   : > { %p1324_p7 = pnand %p1323_p3, %p1317_p10 }
 0x45d   : > { %1327 = shalt.err (!%p1324_p7)
}
 0x45e   : > { %s1385_s29 = smov 128   ;;  %s1386_s11 = smov 8  }
 0x45f   : > { %1107 = dma.vmem_to_hbm [thread:$0]  (%p1580_p5), %s1665_s21, 256, %s1670_s8, %s698_s23, %s1385_s29, %s1385_s29, %s1386_s11  }
 0x460 PF: > { %s1740_s28 = sld [smem:[#allocation15_spill]]  ;;  %p1134_p11 = scmp.ge.s32.totalorder %s1374_s27, 2 }
 0x461   : > { %s726_s30 = sand.u32 1, %s1362_s24  }
 0x462   : > { %s727_s9 = scalar_lea.sflag [#allocation4], %s726_s30 }
 0x466   : > { %p1741_p1 = scmp.ne.s32.totalorder %s1740_s28, 0 }
 0x468   : > { %p1124_p2 = pnand %p1134_p11, %p1741_p1 }
 0x46a   : > { %1357 = dma.done.wait (!%p1124_p2), %s727_s9, 256  }
 0x46b   : > { %1359 = vsyncadd (!%p1124_p2), %s727_s9, 4294967040  ;;  %p22_p4 = scmp.ge.s32.totalorder %s1566_s22, 6   ;;  %s1742_s24 = smov %s1366_s25 }
 0x46c   : > { %s1743_s25 = smov %s1370_s26  ;;  %s1744_s26 = smov %s1576_s18 }
 0x46d   : > { %s1745_s27 = smov %s1566_s22  ;;  %24 = sbr.rel (!%p22_p4) target bundleno = 7 (0x7), region = 105 }
 0x474   :  { %732 = vsyncpa [#allocation3], 1 }
 0x475   :  { %734 = vsyncpa [#allocation3 + $0x1], 1 }
 0x476   :  { %735 = vsyncpa [#allocation6], 1 }
 0x477   :  { %736 = vsyncpa [#allocation9], 1 }
 0x478   :  { %737 = vsyncpa [#allocation4], 1 }
 0x479   :  { %739 = vsyncpa [#allocation4 + $0x1], 1 }

</bundles_post_ra>
